<compile_context>
chip_gen: v7x
topology: tpu7x:2x2x1
jax: 0.10.0
libtpu: 0.0.40
codegen_flags: <defaults>
</compile_context>

<pallas_src>
import functools

import jax
import jax.numpy as jnp
import numpy as np
from jax.experimental import pallas as pl
from jax.experimental.pallas import tpu as pltpu


def _lrelu(x, slope):
    return jnp.where(x >= 0, x, slope * x)


def res_layer_kernel(x_ref, xbot_ref, w1_ref, b1_ref, w2_ref, b2_ref,
                     o_ref, ypad_ref, xs_ref, acc_ref, *,
                     tile_h, neg_slope, mxu_dtype):
    """One (batch, row-tile) output block per grid step.

    x_ref    : (1, TH, W, C)    input rows of this tile (layer1 input + residual)
    xbot_ref : (1, 1, W, C)     row below the tile (clamped; masked at last tile)
    w1_ref   : (C, Cmid)        1x1 conv weight, BN1 scale folded in, mxu dtype
    b1_ref   : (1, Cmid)        BN1 shift
    w2_ref   : (3, 3*Cmid, C)   3x3 conv weight [kh, kw*Cmid+cm, co], BN2 scale folded
    b2_ref   : (1, C)           BN2 shift
    o_ref    : (1, TH, W, C)
    ypad_ref : (TH+2, W+2, Cmid) persistent scratch: zero-padded layer1 output.
                                 Row TH of the previous step is the top halo of
                                 this step (carried; the t axis is sequential).
    xs_ref   : (TH+2, W, 3*Cmid) staging: three kw-shifted views of ypad.
    acc_ref  : (TH*W, C) f32     layer2 accumulator.
    """
    t = pl.program_id(1)
    n_t = pl.num_programs(1)
    TH = tile_h
    _, _, W, C = x_ref.shape
    Cmid = w1_ref.shape[1]

    # Left/right zero-pad columns: zero once per image; never written elsewhere,
    # so they stay zero for t > 0 (scratch persists across grid steps).
    @pl.when(t == 0)
    def _zero_pad_cols():
        ypad_ref[:, 0:1, :] = jnp.zeros((TH + 2, 1, Cmid), ypad_ref.dtype)
        ypad_ref[:, W + 1:W + 2, :] = jnp.zeros((TH + 2, 1, Cmid), ypad_ref.dtype)

    # Top halo carried from the previous row-tile: ypad row TH currently holds
    # layer1(image row t*TH - 1) written by the previous step.  Read it BEFORE
    # overwriting the main rows below.  Garbage at t == 0 is masked to zero.
    top_prev = ypad_ref[TH, 1:W + 1, :]

    w1 = w1_ref[...]           # already mxu dtype, BN scale folded in
    b1 = b1_ref[0]

    def layer1(v2d):           # (R, C) -> (R, Cmid): 1x1 conv + BN + LeakyReLU
        y = jnp.dot(v2d.astype(mxu_dtype), w1, preferred_element_type=jnp.float32)
        return _lrelu(y + b1, neg_slope)

    x_main = x_ref[0]                                           # (TH, W, C)
    y_main = layer1(x_main.reshape(TH * W, C))                  # (TH*W, Cmid) f32
    y_bot = layer1(xbot_ref[0, 0])                              # (W, Cmid) f32

    ypad_ref[1:TH + 1, 1:W + 1, :] = (
        y_main.reshape(TH, W, Cmid).astype(ypad_ref.dtype))
    ypad_ref[TH + 1, 1:W + 1, :] = jnp.where(
        t + 1 < n_t, y_bot, jnp.zeros_like(y_bot)).astype(ypad_ref.dtype)
    ypad_ref[0, 1:W + 1, :] = jnp.where(
        t > 0, top_prev, jnp.zeros_like(top_prev))

    # layer2 (3x3 conv): stage the three kw-shifted views once (3 shifted copies
    # instead of 9), then 3 MXU matmuls with K = 3*Cmid over contiguous row slices.
    for kw in range(3):
        xs_ref[:, :, kw * Cmid:(kw + 1) * Cmid] = ypad_ref[:, kw:kw + W, :]

    for kh in range(3):
        lhs = xs_ref[kh:kh + TH].reshape(TH * W, 3 * Cmid)      # contiguous slice
        contrib = jnp.dot(lhs, w2_ref[kh], preferred_element_type=jnp.float32)
        if kh == 0:
            acc_ref[...] = contrib
        else:
            acc_ref[...] += contrib

    z = _lrelu(acc_ref[...] + b2_ref[0], neg_slope)             # (TH*W, C) f32
    o_ref[0] = (z.reshape(TH, W, C) + x_main.astype(jnp.float32)).astype(o_ref.dtype)


def fold_bn(gamma, beta, mean, var, eps=1e-5):
    scale = gamma / jnp.sqrt(var + eps)
    shift = beta - mean * scale
    return scale, shift


def _vmem_bytes_per_step(TH, W, C, Cmid, x_bytes, mxu_bytes):
    in_main = 2 * TH * W * C * x_bytes          # double-buffered input tile
    in_halo = 2 * W * C * x_bytes               # double-buffered bottom-halo row
    out_blk = 2 * TH * W * C * x_bytes          # double-buffered output tile
    ypad = (TH + 2) * (W + 2) * Cmid * mxu_bytes
    xs = (TH + 2) * W * 3 * Cmid * mxu_bytes
    acc = TH * W * C * 4
    wgt = (C * Cmid + 9 * Cmid * C) * mxu_bytes + (Cmid + C) * 4
    return in_main + in_halo + out_blk + ypad + xs + acc + wgt


def _pick_tile_h(N, H, W, C, Cmid, x_bytes, mxu_bytes, budget=24 * 2**20):
    """Largest row tile (divisor of H) whose working set fits the VMEM budget."""
    tile = 0
    for th in range(1, H + 1):
        if H % th:
            continue
        if _vmem_bytes_per_step(th, W, C, Cmid, x_bytes, mxu_bytes) <= budget:
            tile = th
    if tile == 0:
        tile = 1
    # Keep >= 2 sizable parallel grid steps (v7x has 2 TensorCores) when the
    # batch dimension alone cannot provide them.
    if N < 2 and tile == H and H % 2 == 0:
        tile = H // 2
    return tile


def res_layer_forward_nhwc(x_nhwc, params, *, tile_h=None, neg_slope=0.1,
                           mxu_dtype=jnp.float32):
    """NHWC ResLayer forward (production entry point: no layout transposes)."""
    N, H, W, C = x_nhwc.shape
    Cmid = params["w1"].shape[1]
    x_bytes = jnp.dtype(x_nhwc.dtype).itemsize
    mxu_bytes = jnp.dtype(mxu_dtype).itemsize
    if tile_h is None:
        tile_h = _pick_tile_h(N, H, W, C, Cmid, x_bytes, mxu_bytes)
    tile_h = min(tile_h, H)
    assert H % tile_h == 0, "H must be divisible by tile_h"
    n_tiles = H // tile_h
    TH = tile_h

    # Fold BN into the conv weights host-side; only the shifts go to the kernel.
    s1, b1 = fold_bn(params["bn1_gamma"], params["bn1_beta"],
                     params["bn1_mean"], params["bn1_var"])
    s2, b2 = fold_bn(params["bn2_gamma"], params["bn2_beta"],
                     params["bn2_mean"], params["bn2_var"])
    w1_f = (params["w1"] * s1[None, :]).astype(mxu_dtype)                 # (C, Cmid)
    # (3,3,Cmid,C) -> (3, 3*Cmid, C) with index kw*Cmid + cm; scale output cols.
    w2_f = (params["w2"].reshape(3, 3 * Cmid, C) * s2[None, None, :]).astype(mxu_dtype)

    kern = functools.partial(res_layer_kernel, tile_h=TH,
                             neg_slope=neg_slope, mxu_dtype=mxu_dtype)

    est = _vmem_bytes_per_step(TH, W, C, Cmid, x_bytes, mxu_bytes)
    # Scoped-VMEM limit derived from the actual footprint; capped at 64 MiB so
    # it is valid on v7x (64 MiB / TensorCore).  On 128-MiB v5e/v6e this can be
    # raised towards ~96 MiB if tile_h is enlarged further.
    vmem_limit = int(min(64 * 2**20, max(32 * 2**20, 2 * est)))

    out = pl.pallas_call(
        kern,
        out_shape=jax.ShapeDtypeStruct((N, H, W, C), x_nhwc.dtype),
        grid=(N, n_tiles),
        in_specs=[
            # main tile rows (residual + layer1 input)
            pl.BlockSpec((1, TH, W, C), lambda n, t: (n, t, 0, 0)),
            # 1-row bottom halo (row index clamped at the image border; the
            # kernel masks its contribution to zero on the last tile)
            pl.BlockSpec((1, 1, W, C),
                         lambda n, t: (n, jnp.minimum((t + 1) * TH, H - 1), 0, 0)),
            # weights / BN shifts: resident, constant block index
            pl.BlockSpec((C, Cmid), lambda n, t: (0, 0)),
            pl.BlockSpec((1, Cmid), lambda n, t: (0, 0)),
            pl.BlockSpec((3, 3 * Cmid, C), lambda n, t: (0, 0, 0)),
            pl.BlockSpec((1, C), lambda n, t: (0, 0)),
        ],
        out_specs=pl.BlockSpec((1, TH, W, C), lambda n, t: (n, t, 0, 0)),
        scratch_shapes=[
            pltpu.VMEM((TH + 2, W + 2, Cmid), mxu_dtype),     # ypad (persists; carries top halo)
            pltpu.VMEM((TH + 2, W, 3 * Cmid), mxu_dtype),     # kw-shift staging
            pltpu.VMEM((TH * W, C), jnp.float32),             # layer2 accumulator
        ],
        compiler_params=pltpu.CompilerParams(
            # t axis must be sequential ("arbitrary"): ypad carries the top halo
            # from the previous row tile.  Batch axis stays parallel (megacore).
            dimension_semantics=("parallel", "arbitrary"),
            vmem_limit_bytes=vmem_limit),
    )(x_nhwc, x_nhwc, w1_f, b1.reshape(1, Cmid), w2_f, b2.reshape(1, C))
    return out


def res_layer_forward(x_nchw, params, **kw):
    """NCHW boundary purely for parity with the PyTorch module; a real pipeline
    should stay NHWC and call res_layer_forward_nhwc (avoids two HBM passes)."""
    x = jnp.transpose(x_nchw, (0, 2, 3, 1)).astype(jnp.float32)
    out = res_layer_forward_nhwc(x, params, **kw)
    return jnp.transpose(out, (0, 3, 1, 2))


def reference_forward(x_nchw, params, *, neg_slope=0.1, eps=1e-5):
    """Pure-JAX reference matching torch ResLayer (inference-mode BN)."""
    def bn(v, gamma, beta, mean, var):
        vv = (v - mean[None, :, None, None]) / jnp.sqrt(var[None, :, None, None] + eps)
        return vv * gamma[None, :, None, None] + beta[None, :, None, None]

    def lrelu(v):
        return jnp.where(v >= 0, v, neg_slope * v)

    w1_oihw = jnp.transpose(params["w1"], (1, 0))[:, :, None, None]   # (Cmid, C, 1, 1)
    y = jax.lax.conv_general_dilated(x_nchw, w1_oihw, (1, 1), [(0, 0), (0, 0)],
                                     dimension_numbers=("NCHW", "OIHW", "NCHW"))
    y = lrelu(bn(y, params["bn1_gamma"], params["bn1_beta"],
                 params["bn1_mean"], params["bn1_var"]))

    w2_oihw = jnp.transpose(params["w2"], (3, 2, 0, 1))               # (C, Cmid, 3, 3)
    z = jax.lax.conv_general_dilated(y, w2_oihw, (1, 1), [(1, 1), (1, 1)],
                                     dimension_numbers=("NCHW", "OIHW", "NCHW"))
    z = lrelu(bn(z, params["bn2_gamma"], params["bn2_beta"],
                 params["bn2_mean"], params["bn2_var"]))
    return z + x_nchw


def make_params(key, in_channels):
    C = in_channels
    Cmid = C // 2
    ks = jax.random.split(key, 10)
    return {
        # layer1: 1x1 conv weight stored as (C, Cmid)  (torch: (Cmid, C, 1, 1))
        "w1": 0.3 * jax.random.normal(ks[0], (C, Cmid), jnp.float32),
        "bn1_gamma": 1.0 + 0.1 * jax.random.normal(ks[1], (Cmid,), jnp.float32),
        "bn1_beta": 0.1 * jax.random.normal(ks[2], (Cmid,), jnp.float32),
        "bn1_mean": 0.1 * jax.random.normal(ks[3], (Cmid,), jnp.float32),
        "bn1_var": 0.5 + jnp.abs(jax.random.normal(ks[4], (Cmid,), jnp.float32)),
        # layer2: 3x3 conv weight stored as (3, 3, Cmid, C)  (torch: (C, Cmid, 3, 3))
        "w2": 0.1 * jax.random.normal(ks[5], (3, 3, Cmid, C), jnp.float32),
        "bn2_gamma": 1.0 + 0.1 * jax.random.normal(ks[6], (C,), jnp.float32),
        "bn2_beta": 0.1 * jax.random.normal(ks[7], (C,), jnp.float32),
        "bn2_mean": 0.1 * jax.random.normal(ks[8], (C,), jnp.float32),
        "bn2_var": 0.5 + jnp.abs(jax.random.normal(ks[9], (C,), jnp.float32)),
    }


if __name__ == "__main__":
    # ResLayer(in_channels=8): mid_channels = 4.  Small deterministic test.
    N, C, H, W = 2, 8, 16, 16
    key = jax.random.PRNGKey(0)
    kx, kp = jax.random.split(key)
    x = jax.random.normal(kx, (N, C, H, W), jnp.float32)
    params = make_params(kp, C)

    ref = reference_forward(x, params)

    # Exercise multi-tile (halo carry), 2-tile and single-tile (both borders
    # clamped) paths, plus the auto tile picker.
    for th in (4, 8, 16, None):
        out = res_layer_forward(x, params, tile_h=th)
        out = jax.block_until_ready(out)
        np.testing.assert_allclose(np.asarray(out), np.asarray(ref),
                                   rtol=1e-4, atol=1e-4)

    # TODO(synk): for production pass mxu_dtype=jnp.bfloat16 (v6e/v7x MXU rate,
    # halves activation/weight VMEM) and use channel counts >= 128 for
    # lane-dense matmuls; kept f32 / tiny channels here for the parity check.
    print("KERNEL_OK")
</pallas_src>

<mosaic_0001>
module attributes {stable_mosaic.version = 11 : i64} {
  func.func @res_layer_kernel(%arg0: i32, %arg1: i32, %arg2: memref<1x4x16x8xf32, #tpu.memory_space<vmem>>, %arg3: memref<1x1x16x8xf32, #tpu.memory_space<vmem>>, %arg4: memref<8x4xf32, #tpu.memory_space<vmem>>, %arg5: memref<1x4xf32, #tpu.memory_space<vmem>>, %arg6: memref<3x12x8xf32, #tpu.memory_space<vmem>>, %arg7: memref<1x8xf32, #tpu.memory_space<vmem>>, %arg8: memref<1x4x16x8xf32, #tpu.memory_space<vmem>>, %arg9: memref<6x18x4xf32, #tpu.memory_space<vmem>>, %arg10: memref<6x16x12xf32, #tpu.memory_space<vmem>>, %arg11: memref<64x8xf32, #tpu.memory_space<vmem>>) attributes {dimension_semantics = [#tpu.dimension_semantics<parallel>, #tpu.dimension_semantics<arbitrary>], iteration_bounds = array<i64: 2, 4>, scalar_prefetch = 0 : i64, scratch_operands = 3 : i64, tpu.core_type = #tpu.core_type<tc>, window_params = [{transform_indices = @transform_0, window_bounds = array<i64: 1, 4, 16, 8>}, {transform_indices = @transform_1, window_bounds = array<i64: 1, 1, 16, 8>}, {pipeline_mode = #tpu.pipeline_mode<synchronous>, transform_indices = @transform_2, window_bounds = array<i64: 8, 4>}, {pipeline_mode = #tpu.pipeline_mode<synchronous>, transform_indices = @transform_3, window_bounds = array<i64: 1, 4>}, {pipeline_mode = #tpu.pipeline_mode<synchronous>, transform_indices = @transform_4, window_bounds = array<i64: 3, 12, 8>}, {pipeline_mode = #tpu.pipeline_mode<synchronous>, transform_indices = @transform_5, window_bounds = array<i64: 1, 8>}, {transform_indices = @transform_6, window_bounds = array<i64: 1, 4, 16, 8>}]} {
    %c0_i32 = arith.constant 0 : i32
    %0 = arith.cmpi eq, %arg1, %c0_i32 : i32
    %1 = arith.extui %0 : i1 to i32
    %c0_i32_0 = arith.constant 0 : i32
    %2 = arith.cmpi ne, %1, %c0_i32_0 : i32
    scf.if %2 {
      %cst_86 = arith.constant 0.000000e+00 : f32
      %90 = vector.broadcast %cst_86 : f32 to vector<6x1x4xf32>
      %c0_87 = arith.constant 0 : index
      %c0_88 = arith.constant 0 : index
      %c0_89 = arith.constant 0 : index
      %91 = vector.load %arg9[%c0_87, %c0_88, %c0_89] : memref<6x18x4xf32, #tpu.memory_space<vmem>>, vector<6x1x4xf32>
      tpu.vector_store %arg9[%c0_87, %c0_88, %c0_89], %90 {strides = array<i32>} : memref<6x18x4xf32, #tpu.memory_space<vmem>>, vector<6x1x4xf32>,
      %cst_90 = arith.constant 0.000000e+00 : f32
      %92 = vector.broadcast %cst_90 : f32 to vector<6x1x4xf32>
      %c0_91 = arith.constant 0 : index
      %c17 = arith.constant 17 : index
      %c0_92 = arith.constant 0 : index
      %93 = vector.load %arg9[%c0_91, %c17, %c0_92] : memref<6x18x4xf32, #tpu.memory_space<vmem>>, vector<6x1x4xf32>
      tpu.vector_store %arg9[%c0_91, %c17, %c0_92], %92 {strides = array<i32>} : memref<6x18x4xf32, #tpu.memory_space<vmem>>, vector<6x1x4xf32>,
    } else {
    }
    %c4 = arith.constant 4 : index
    %c1 = arith.constant 1 : index
    %c0 = arith.constant 0 : index
    %3 = vector.load %arg9[%c4, %c1, %c0] : memref<6x18x4xf32, #tpu.memory_space<vmem>>, vector<1x16x4xf32>
    %4 = vector.shape_cast %3 : vector<1x16x4xf32> to vector<16x4xf32>
    %c0_1 = arith.constant 0 : index
    %c0_2 = arith.constant 0 : index
    %5 = vector.load %arg4[%c0_1, %c0_2] : memref<8x4xf32, #tpu.memory_space<vmem>>, vector<8x4xf32>
    %c0_3 = arith.constant 0 : index
    %c0_4 = arith.constant 0 : index
    %6 = vector.load %arg5[%c0_3, %c0_4] : memref<1x4xf32, #tpu.memory_space<vmem>>, vector<1x4xf32>
    %7 = vector.shape_cast %6 : vector<1x4xf32> to vector<4xf32>
    %c0_5 = arith.constant 0 : index
    %c0_6 = arith.constant 0 : index
    %c0_7 = arith.constant 0 : index
    %c0_8 = arith.constant 0 : index
    %8 = vector.load %arg2[%c0_5, %c0_6, %c0_7, %c0_8] : memref<1x4x16x8xf32, #tpu.memory_space<vmem>>, vector<1x4x16x8xf32>
    %9 = vector.shape_cast %8 : vector<1x4x16x8xf32> to vector<4x16x8xf32>
    %10 = vector.shape_cast %9 : vector<4x16x8xf32> to vector<64x8xf32>
    %cst = arith.constant dense<0.000000e+00> : vector<64x4xf32>
    %11 = tpu.matmul %10, %5, %cst {dimension_numbers = #tpu.dot_dimension_numbers<[1], [0], [0], [1], [0, 0, 1, 1], [], []>} : vector<64x8xf32>, vector<8x4xf32>, vector<64x4xf32> -> vector<64x4xf32>
    %12 = vector.shape_cast %7 : vector<4xf32> to vector<1x4xf32>
    %13 = vector.broadcast %12 : vector<1x4xf32> to vector<64x4xf32>
    %14 = arith.addf %11, %13 : vector<64x4xf32>
    %cst_9 = arith.constant 0.000000e+00 : f32
    %15 = vector.broadcast %cst_9 : f32 to vector<64x4xf32>
    %16 = arith.cmpf oge, %14, %15 : vector<64x4xf32>
    %cst_10 = arith.constant 1.000000e-01 : f32
    %17 = vector.broadcast %cst_10 : f32 to vector<64x4xf32>
    %18 = arith.mulf %17, %14 : vector<64x4xf32>
    %19 = arith.select %16, %14, %18 : vector<64x4xi1>, vector<64x4xf32>
    %c0_11 = arith.constant 0 : index
    %c0_12 = arith.constant 0 : index
    %c0_13 = arith.constant 0 : index
    %c0_14 = arith.constant 0 : index
    %20 = vector.load %arg3[%c0_11, %c0_12, %c0_13, %c0_14] : memref<1x1x16x8xf32, #tpu.memory_space<vmem>>, vector<1x1x16x8xf32>
    %21 = vector.shape_cast %20 : vector<1x1x16x8xf32> to vector<16x8xf32>
    %cst_15 = arith.constant dense<0.000000e+00> : vector<16x4xf32>
    %22 = tpu.matmul %21, %5, %cst_15 {dimension_numbers = #tpu.dot_dimension_numbers<[1], [0], [0], [1], [0, 0, 1, 1], [], []>} : vector<16x8xf32>, vector<8x4xf32>, vector<16x4xf32> -> vector<16x4xf32>
    %23 = vector.shape_cast %7 : vector<4xf32> to vector<1x4xf32>
    %24 = vector.broadcast %23 : vector<1x4xf32> to vector<16x4xf32>
    %25 = arith.addf %22, %24 : vector<16x4xf32>
    %cst_16 = arith.constant 0.000000e+00 : f32
    %26 = vector.broadcast %cst_16 : f32 to vector<16x4xf32>
    %27 = arith.cmpf oge, %25, %26 : vector<16x4xf32>
    %cst_17 = arith.constant 1.000000e-01 : f32
    %28 = vector.broadcast %cst_17 : f32 to vector<16x4xf32>
    %29 = arith.mulf %28, %25 : vector<16x4xf32>
    %30 = arith.select %27, %25, %29 : vector<16x4xi1>, vector<16x4xf32>
    %31 = vector.shape_cast %19 : vector<64x4xf32> to vector<4x16x4xf32>
    %c1_18 = arith.constant 1 : index
    %c1_19 = arith.constant 1 : index
    %c0_20 = arith.constant 0 : index
    %32 = vector.load %arg9[%c1_18, %c1_19, %c0_20] : memref<6x18x4xf32, #tpu.memory_space<vmem>>, vector<4x16x4xf32>
    tpu.vector_store %arg9[%c1_18, %c1_19, %c0_20], %31 {strides = array<i32>} : memref<6x18x4xf32, #tpu.memory_space<vmem>>, vector<4x16x4xf32>,
    %c1_i32 = arith.constant 1 : i32
    %33 = arith.addi %arg1, %c1_i32 : i32
    %c4_i32 = arith.constant 4 : i32
    %34 = arith.cmpi slt, %33, %c4_i32 : i32
    %cst_21 = arith.constant 0.000000e+00 : f32
    %35 = vector.broadcast %cst_21 : f32 to vector<16x4xf32>
    %36 = arith.select %34, %30, %35 : vector<16x4xf32>
    %c5 = arith.constant 5 : index
    %c1_22 = arith.constant 1 : index
    %c0_23 = arith.constant 0 : index
    %37 = vector.load %arg9[%c5, %c1_22, %c0_23] : memref<6x18x4xf32, #tpu.memory_space<vmem>>, vector<1x16x4xf32>
    %38 = vector.shape_cast %37 : vector<1x16x4xf32> to vector<16x4xf32>
    %39 = vector.shape_cast %36 : vector<16x4xf32> to vector<1x16x4xf32>
    tpu.vector_store %arg9[%c5, %c1_22, %c0_23], %39 {strides = array<i32>} : memref<6x18x4xf32, #tpu.memory_space<vmem>>, vector<1x16x4xf32>,
    %c0_i32_24 = arith.constant 0 : i32
    %40 = arith.cmpi sgt, %arg1, %c0_i32_24 : i32
    %cst_25 = arith.constant 0.000000e+00 : f32
    %41 = vector.broadcast %cst_25 : f32 to vector<16x4xf32>
    %42 = arith.select %40, %4, %41 : vector<16x4xf32>
    %c0_26 = arith.constant 0 : index
    %c1_27 = arith.constant 1 : index
    %c0_28 = arith.constant 0 : index
    %43 = vector.load %arg9[%c0_26, %c1_27, %c0_28] : memref<6x18x4xf32, #tpu.memory_space<vmem>>, vector<1x16x4xf32>
    %44 = vector.shape_cast %43 : vector<1x16x4xf32> to vector<16x4xf32>
    %45 = vector.shape_cast %42 : vector<16x4xf32> to vector<1x16x4xf32>
    tpu.vector_store %arg9[%c0_26, %c1_27, %c0_28], %45 {strides = array<i32>} : memref<6x18x4xf32, #tpu.memory_space<vmem>>, vector<1x16x4xf32>,
    %c0_29 = arith.constant 0 : index
    %c0_30 = arith.constant 0 : index
    %c0_31 = arith.constant 0 : index
    %46 = vector.load %arg9[%c0_29, %c0_30, %c0_31] : memref<6x18x4xf32, #tpu.memory_space<vmem>>, vector<6x16x4xf32>
    %c0_32 = arith.constant 0 : index
    %c0_33 = arith.constant 0 : index
    %c0_34 = arith.constant 0 : index
    %47 = vector.load %arg10[%c0_32, %c0_33, %c0_34] : memref<6x16x12xf32, #tpu.memory_space<vmem>>, vector<6x16x4xf32>
    tpu.vector_store %arg10[%c0_32, %c0_33, %c0_34], %46 {strides = array<i32>} : memref<6x16x12xf32, #tpu.memory_space<vmem>>, vector<6x16x4xf32>,
    %c0_35 = arith.constant 0 : index
    %c1_36 = arith.constant 1 : index
    %c0_37 = arith.constant 0 : index
    %48 = vector.load %arg9[%c0_35, %c1_36, %c0_37] : memref<6x18x4xf32, #tpu.memory_space<vmem>>, vector<6x16x4xf32>
    %c0_38 = arith.constant 0 : index
    %c0_39 = arith.constant 0 : index
    %c4_40 = arith.constant 4 : index
    %49 = vector.load %arg10[%c0_38, %c0_39, %c4_40] : memref<6x16x12xf32, #tpu.memory_space<vmem>>, vector<6x16x4xf32>
    tpu.vector_store %arg10[%c0_38, %c0_39, %c4_40], %48 {strides = array<i32>} : memref<6x16x12xf32, #tpu.memory_space<vmem>>, vector<6x16x4xf32>,
    %c0_41 = arith.constant 0 : index
    %c2 = arith.constant 2 : index
    %c0_42 = arith.constant 0 : index
    %50 = vector.load %arg9[%c0_41, %c2, %c0_42] : memref<6x18x4xf32, #tpu.memory_space<vmem>>, vector<6x16x4xf32>
    %c0_43 = arith.constant 0 : index
    %c0_44 = arith.constant 0 : index
    %c8 = arith.constant 8 : index
    %51 = vector.load %arg10[%c0_43, %c0_44, %c8] : memref<6x16x12xf32, #tpu.memory_space<vmem>>, vector<6x16x4xf32>
    tpu.vector_store %arg10[%c0_43, %c0_44, %c8], %50 {strides = array<i32>} : memref<6x16x12xf32, #tpu.memory_space<vmem>>, vector<6x16x4xf32>,
    %c0_45 = arith.constant 0 : index
    %c0_46 = arith.constant 0 : index
    %c0_47 = arith.constant 0 : index
    %52 = vector.load %arg10[%c0_45, %c0_46, %c0_47] : memref<6x16x12xf32, #tpu.memory_space<vmem>>, vector<4x16x12xf32>
    %53 = vector.shape_cast %52 : vector<4x16x12xf32> to vector<64x12xf32>
    %c0_48 = arith.constant 0 : index
    %c0_49 = arith.constant 0 : index
    %c0_50 = arith.constant 0 : index
    %54 = vector.load %arg6[%c0_48, %c0_49, %c0_50] : memref<3x12x8xf32, #tpu.memory_space<vmem>>, vector<1x12x8xf32>
    %55 = vector.shape_cast %54 : vector<1x12x8xf32> to vector<12x8xf32>
    %cst_51 = arith.constant dense<0.000000e+00> : vector<64x8xf32>
    %56 = tpu.matmul %53, %55, %cst_51 {dimension_numbers = #tpu.dot_dimension_numbers<[1], [0], [0], [1], [0, 0, 1, 1], [], []>} : vector<64x12xf32>, vector<12x8xf32>, vector<64x8xf32> -> vector<64x8xf32>
    %c0_52 = arith.constant 0 : index
    %c0_53 = arith.constant 0 : index
    %57 = vector.load %arg11[%c0_52, %c0_53] : memref<64x8xf32, #tpu.memory_space<vmem>>, vector<64x8xf32>
    tpu.vector_store %arg11[%c0_52, %c0_53], %56 {strides = array<i32>} : memref<64x8xf32, #tpu.memory_space<vmem>>, vector<64x8xf32>,
    %c1_54 = arith.constant 1 : index
    %c0_55 = arith.constant 0 : index
    %c0_56 = arith.constant 0 : index
    %58 = vector.load %arg10[%c1_54, %c0_55, %c0_56] : memref<6x16x12xf32, #tpu.memory_space<vmem>>, vector<4x16x12xf32>
    %59 = vector.shape_cast %58 : vector<4x16x12xf32> to vector<64x12xf32>
    %c1_57 = arith.constant 1 : index
    %c0_58 = arith.constant 0 : index
    %c0_59 = arith.constant 0 : index
    %60 = vector.load %arg6[%c1_57, %c0_58, %c0_59] : memref<3x12x8xf32, #tpu.memory_space<vmem>>, vector<1x12x8xf32>
    %61 = vector.shape_cast %60 : vector<1x12x8xf32> to vector<12x8xf32>
    %cst_60 = arith.constant dense<0.000000e+00> : vector<64x8xf32>
    %62 = tpu.matmul %59, %61, %cst_60 {dimension_numbers = #tpu.dot_dimension_numbers<[1], [0], [0], [1], [0, 0, 1, 1], [], []>} : vector<64x12xf32>, vector<12x8xf32>, vector<64x8xf32> -> vector<64x8xf32>
    %c0_61 = arith.constant 0 : index
    %c0_62 = arith.constant 0 : index
    %63 = vector.load %arg11[%c0_61, %c0_62] : memref<64x8xf32, #tpu.memory_space<vmem>>, vector<64x8xf32>
    %64 = arith.addf %63, %62 : vector<64x8xf32>
    %c0_63 = arith.constant 0 : index
    %c0_64 = arith.constant 0 : index
    %65 = vector.load %arg11[%c0_63, %c0_64] : memref<64x8xf32, #tpu.memory_space<vmem>>, vector<64x8xf32>
    tpu.vector_store %arg11[%c0_63, %c0_64], %64 {strides = array<i32>} : memref<64x8xf32, #tpu.memory_space<vmem>>, vector<64x8xf32>,
    %c2_65 = arith.constant 2 : index
    %c0_66 = arith.constant 0 : index
    %c0_67 = arith.constant 0 : index
    %66 = vector.load %arg10[%c2_65, %c0_66, %c0_67] : memref<6x16x12xf32, #tpu.memory_space<vmem>>, vector<4x16x12xf32>
    %67 = vector.shape_cast %66 : vector<4x16x12xf32> to vector<64x12xf32>
    %c2_68 = arith.constant 2 : index
    %c0_69 = arith.constant 0 : index
    %c0_70 = arith.constant 0 : index
    %68 = vector.load %arg6[%c2_68, %c0_69, %c0_70] : memref<3x12x8xf32, #tpu.memory_space<vmem>>, vector<1x12x8xf32>
    %69 = vector.shape_cast %68 : vector<1x12x8xf32> to vector<12x8xf32>
    %cst_71 = arith.constant dense<0.000000e+00> : vector<64x8xf32>
    %70 = tpu.matmul %67, %69, %cst_71 {dimension_numbers = #tpu.dot_dimension_numbers<[1], [0], [0], [1], [0, 0, 1, 1], [], []>} : vector<64x12xf32>, vector<12x8xf32>, vector<64x8xf32> -> vector<64x8xf32>
    %c0_72 = arith.constant 0 : index
    %c0_73 = arith.constant 0 : index
    %71 = vector.load %arg11[%c0_72, %c0_73] : memref<64x8xf32, #tpu.memory_space<vmem>>, vector<64x8xf32>
    %72 = arith.addf %71, %70 : vector<64x8xf32>
    %c0_74 = arith.constant 0 : index
    %c0_75 = arith.constant 0 : index
    %73 = vector.load %arg11[%c0_74, %c0_75] : memref<64x8xf32, #tpu.memory_space<vmem>>, vector<64x8xf32>
    tpu.vector_store %arg11[%c0_74, %c0_75], %72 {strides = array<i32>} : memref<64x8xf32, #tpu.memory_space<vmem>>, vector<64x8xf32>,
    %c0_76 = arith.constant 0 : index
    %c0_77 = arith.constant 0 : index
    %74 = vector.load %arg11[%c0_76, %c0_77] : memref<64x8xf32, #tpu.memory_space<vmem>>, vector<64x8xf32>
    %c0_78 = arith.constant 0 : index
    %c0_79 = arith.constant 0 : index
    %75 = vector.load %arg7[%c0_78, %c0_79] : memref<1x8xf32, #tpu.memory_space<vmem>>, vector<1x8xf32>
    %76 = vector.shape_cast %75 : vector<1x8xf32> to vector<8xf32>
    %77 = vector.shape_cast %76 : vector<8xf32> to vector<1x8xf32>
    %78 = vector.broadcast %77 : vector<1x8xf32> to vector<64x8xf32>
    %79 = arith.addf %74, %78 : vector<64x8xf32>
    %cst_80 = arith.constant 0.000000e+00 : f32
    %80 = vector.broadcast %cst_80 : f32 to vector<64x8xf32>
    %81 = arith.cmpf oge, %79, %80 : vector<64x8xf32>
    %cst_81 = arith.constant 1.000000e-01 : f32
    %82 = vector.broadcast %cst_81 : f32 to vector<64x8xf32>
    %83 = arith.mulf %82, %79 : vector<64x8xf32>
    %84 = arith.select %81, %79, %83 : vector<64x8xi1>, vector<64x8xf32>
    %85 = vector.shape_cast %84 : vector<64x8xf32> to vector<4x16x8xf32>
    %86 = arith.addf %85, %9 : vector<4x16x8xf32>
    %c0_82 = arith.constant 0 : index
    %c0_83 = arith.constant 0 : index
    %c0_84 = arith.constant 0 : index
    %c0_85 = arith.constant 0 : index
    %87 = vector.load %arg8[%c0_82, %c0_83, %c0_84, %c0_85] : memref<1x4x16x8xf32, #tpu.memory_space<vmem>>, vector<1x4x16x8xf32>
    %88 = vector.shape_cast %87 : vector<1x4x16x8xf32> to vector<4x16x8xf32>
    %89 = vector.shape_cast %86 : vector<4x16x8xf32> to vector<1x4x16x8xf32>
    tpu.vector_store %arg8[%c0_82, %c0_83, %c0_84, %c0_85], %89 {strides = array<i32>} : memref<1x4x16x8xf32, #tpu.memory_space<vmem>>, vector<1x4x16x8xf32>,
    return
  }
  func.func @transform_0(%arg0: i32, %arg1: i32) -> (i32, i32, i32, i32) {
    %c0_i32 = arith.constant 0 : i32
    %c0_i32_0 = arith.constant 0 : i32
    %c0_i32_1 = arith.constant 0 : i32
    return %arg0, %arg1, %c0_i32, %c0_i32_0 : i32, i32, i32, i32
  }
  func.func @transform_1(%arg0: i32, %arg1: i32) -> (i32, i32, i32, i32) {
    %c1_i32 = arith.constant 1 : i32
    %0 = arith.addi %arg1, %c1_i32 : i32
    %c4_i32 = arith.constant 4 : i32
    %1 = arith.muli %0, %c4_i32 : i32
    %c15_i32 = arith.constant 15 : i32
    %2 = arith.minsi %1, %c15_i32 : i32
    %c0_i32 = arith.constant 0 : i32
    %c0_i32_0 = arith.constant 0 : i32
    %c0_i32_1 = arith.constant 0 : i32
    return %arg0, %2, %c0_i32, %c0_i32_0 : i32, i32, i32, i32
  }
  func.func @transform_2(%arg0: i32, %arg1: i32) -> (i32, i32) {
    %c0_i32 = arith.constant 0 : i32
    %c0_i32_0 = arith.constant 0 : i32
    %c0_i32_1 = arith.constant 0 : i32
    return %c0_i32, %c0_i32_0 : i32, i32
  }
  func.func @transform_3(%arg0: i32, %arg1: i32) -> (i32, i32) {
    %c0_i32 = arith.constant 0 : i32
    %c0_i32_0 = arith.constant 0 : i32
    %c0_i32_1 = arith.constant 0 : i32
    return %c0_i32, %c0_i32_0 : i32, i32
  }
  func.func @transform_4(%arg0: i32, %arg1: i32) -> (i32, i32, i32) {
    %c0_i32 = arith.constant 0 : i32
    %c0_i32_0 = arith.constant 0 : i32
    %c0_i32_1 = arith.constant 0 : i32
    %c0_i32_2 = arith.constant 0 : i32
    return %c0_i32, %c0_i32_0, %c0_i32_1 : i32, i32, i32
  }
  func.func @transform_5(%arg0: i32, %arg1: i32) -> (i32, i32) {
    %c0_i32 = arith.constant 0 : i32
    %c0_i32_0 = arith.constant 0 : i32
    %c0_i32_1 = arith.constant 0 : i32
    return %c0_i32, %c0_i32_0 : i32, i32
  }
  func.func @transform_6(%arg0: i32, %arg1: i32) -> (i32, i32, i32, i32) {
    %c0_i32 = arith.constant 0 : i32
    %c0_i32_0 = arith.constant 0 : i32
    %c0_i32_1 = arith.constant 0 : i32
    return %arg0, %arg1, %c0_i32, %c0_i32_0 : i32, i32, i32, i32
  }
}

</mosaic_0001>

<bundles_post_ra>
// kernel: tpu_custom_call.1
= control target key start
LH: loop header
LB: loop body
LE: loop exit
PB: predicated region body
PF: predicated region fallthrough
CT: control target
= control target key end

     0   :  { %s1836_s21 = smov 0   ;;  %s1838_s22 = smov 0   ;;  %s2153_s0 = inlined_call_operand.vmem [shape: f32[2,16,16,8], index: 0, kind: input, shape index: {}]   ;;  %s2154_s1 = inlined_call_operand.vmem [shape: f32[2,16,16,8], index: 1, kind: input, shape index: {}]   ;;  %s2155_s2 = inlined_call_operand.vmem [shape: f32[8,4], index: 2, kind: input, shape index: {}]   ;;  %s2156_s3 = inlined_call_operand.vmem [shape: f32[1,4], index: 3, kind: input, shape index: {}]   ;;  %s2157_s4 = inlined_call_operand.vmem [shape: f32[3,12,8], index: 4, kind: input, shape index: {}]   ;;  %s2158_s5 = inlined_call_operand.vmem [shape: f32[1,8], index: 5, kind: input, shape index: {}]   ;;  %s2159_s6 = inlined_call_operand.vmem [shape: f32[2,16,16,8], index: 6, kind: output, shape index: {}]  }
   0x1   :  { %s1840_s23 = smov 0   ;;  %s1842_s24 = smov 0  }
   0x2   :  { %s1844_s25 = smov 0  }
   0x3 LB: > { %s25_s26 = sadd.s32 1, %s1787_s23  ;;  %s28_s27 = sadd.s32 1, %s1791_s24  ;;  %s1795_s25 = sphi %s1844_s25, %s16_s25   ;;  %s1791_s24 = sphi %s1842_s24, %s2165_s24   ;;  %s1787_s23 = sphi %s1840_s23, %s2164_s23   ;;  %s1783_s22 = sphi %s1838_s22, %s2163_s22   ;;  %s1779_s21 = sphi %s1836_s21, %s2162_s21  }
   0x4   : > { %p26_p0 = scmp.ge.s32.totalorder %s25_s26, 4  ;;  %p1512_p1 = scmp.ge.s32.totalorder %s1795_s25, 1 }
   0x5   : > { %p266_p2 = scmp.lt.s32.totalorder %s1795_s25, 9 }
   0x6   : > { %s2167_s26 = smov (%p26_p0, %s25_s26), 0  ;;  %s2169_s27 = smov (!%p26_p0, %s28_s27), %s1791_s24 }
   0x7   : > { %p267_p3 = pnand %p1512_p1, %p266_p2  ;;  %p30_p4 = scmp.ge.s32.totalorder %s2169_s27, 2 }
   0x8   : > { %s1513_s28 = sshll.u32 (!%p267_p3), %s1779_s21, 2  ;;  %p320_p5 = scmp.lt.s32.totalorder (!%p267_p3), %s1783_s22, 1 }
   0x9   : > { %s2171_s27 = smov (%p30_p4, %s2169_s27), 0  ;;  %270 = sbr.rel (%p267_p3) target bundleno = 651 (0x28b), region = 44 }
   0xa   : > { %p322_p6 = scmp.lt.s32.totalorder (!%p267_p3), %s1513_s28, 15  ;;  %s1579_s29 = sadd.s32 (!%p267_p3), 4, %s1513_s28 }
   0xb   : > { %p332_p7 = scmp.lt.s32.totalorder (!%p267_p3), %s1579_s29, 15  ;;  %p1528_p8 = scmp.ne.s32.totalorder (!%p267_p3), %s1779_s21, 0 }
  0x10   : > { %s2173_s22 = smov (!%p320_p5, %s1783_s22), 1  ;;  %s2175_s28 = smov (!%p322_p6, %s1513_s28), 15 }
  0x11   : > { %s1515_s30 = sshll.u32 %s2173_s22, 5  ;;  %s1514_s7 = sshll.u32 %s2175_s28, 1  ;;  %vm362_vm0 = vcmask (!%p1528_p8), 24576   ;;  %v1797_v0 = vmov (!%p1528_p8), 0.0  }
  0x12   : > { %s326_s8 = sadd.s32 %s1515_s30, %s1514_s7  ;;  %s2177_s29 = smov (!%p332_p7, %s1579_s29), 15  ;;  %363 = vst.msk [vmem:[#allocation2] sm:$0x1] (!%p1528_p8), %vm362_vm0, %v1797_v0  ;;  %364 = vst.msk [vmem:[#allocation2 + $0x18] sm:$0x1] (!%p1528_p8), %vm362_vm0, %v1797_v0 }
  0x13   : > { %s1516_s9 = sshll.u32 %s326_s8, 3  ;;  %s2179_s29 = smov (!%p332_p7, %s2177_s29), 15  ;;  %365 = vst.msk [vmem:[#allocation2 + $0x30] sm:$0x1] (!%p1528_p8), %vm362_vm0, %v1797_v0  ;;  %366 = vst.msk [vmem:[#allocation2 + $0x48] sm:$0x1] (!%p1528_p8), %vm362_vm0, %v1797_v0 }
  0x14   : > { %s1872_s12 = scalar_lea.vmem %s2153_s0, %s1516_s9  ;;  %s1877_s15 = scalar_lea.vmem %s2159_s6, %s1516_s9  ;;  %367 = vst.msk [vmem:[#allocation2 + $0x60] sm:$0x1] (!%p1528_p8), %vm362_vm0, %v1797_v0  ;;  %368 = vst.msk [vmem:[#allocation2 + $0x78] sm:$0x1] (!%p1528_p8), %vm362_vm0, %v1797_v0 }
  0x15   : > { %s1521_s16 = sshll.u32 %s2179_s29, 1  ;;  %361 = sbr.rel (%p1528_p8) target bundleno = 28 (0x1c), region = 48  ;;  %369 = vst.msk [vmem:[#allocation2 + $0x11] sm:$0x1] (!%p1528_p8), %vm362_vm0, %v1797_v0  ;;  %370 = vst.msk [vmem:[#allocation2 + $0x29] sm:$0x1] (!%p1528_p8), %vm362_vm0, %v1797_v0 }
  0x16   : > { %s340_s17 = sadd.s32 %s1521_s16, %s1515_s30  ;;  %371 = vst.msk [vmem:[#allocation2 + $0x41] sm:$0x1] (!%p1528_p8), %vm362_vm0, %v1797_v0  ;;  %372 = vst.msk [vmem:[#allocation2 + $0x59] sm:$0x1] (!%p1528_p8), %vm362_vm0, %v1797_v0 }
  0x17   : > { %s1523_s18 = sshll.u32 %s340_s17, 3  ;;  %373 = vst.msk [vmem:[#allocation2 + $0x71] sm:$0x1] (!%p1528_p8), %vm362_vm0, %v1797_v0  ;;  %374 = vst.msk [vmem:[#allocation2 + $0x89] sm:$0x1] (!%p1528_p8), %vm362_vm0, %v1797_v0 }
  0x18   : > { %s342_s22 = scalar_lea.vmem %s2154_s1, %s1523_s18 }
  0x1c PF: > { %v378_v1 = vld [vmem:[%s2155_s2] sm:$0xff]  ;;  %vm394_vm1 = vcmask 64512   ;;  %v1890_v3 = vld [vmem:[%s1872_s12 + $0x8] sm:$0xff]  ;;  %v1895_v4 = vld [vmem:[%s1872_s12 + $0x10] sm:$0xff]  ;;  %p657_p9 = scmp.gt.s32.totalorder %s1779_s21, 0  ;;  %vm638_vm2 = vcmask 31744  }
  0x1d   : > { %v1887_v2 = vld [vmem:[%s1872_s12] sm:$0xff]  ;;  %1622 = vmatprep.subr.mxu0 %v378_v1  ;;  %1636 = vmatprep.subr.mxu1 %v378_v1  ;;  %v549_v6 = vld [vmem:[%s342_s22 + $0x8] sm:$0xff]  ;;  %v1902_v7 = vld [vmem:[%s1872_s12 + $0x18] sm:$0xff]  ;;  %s1798_s7 = smov 4   ;;  %s1799_s8 = smov 8   ;;  %vm749_vm3 = vcmask 64544  }
  0x1e   : > { %1624 = vmatprep.mubr.msk.f32.mxu0 %vm394_vm1, %v1887_v2  ;;  %1623 = vmatpush3.msra.mxu0 %v378_v1  ;;  %v548_v5 = vld [vmem:[%s342_s22] sm:$0xff]  ;;  %v1914_v9 = vld [vmem:[%s1872_s12 + $0x28] sm:$0xff]  ;;  %v1917_v10 = vld [vmem:[%s1872_s12 + $0x30] sm:$0xff]  ;;  %s1752_s30 = scalar_select %p657_p9, 255, 0  ;;  %vm822_vm4 = vcmask 97344  }
  0x1f   : > { %1625 = vmatmul.mubr.msk.f32.vlgmr.msra.gmra.mrb[0].mxu0 %vm394_vm1, %v1890_v3  ;;  %1637 = vmatpush3.msra.mxu1 %v378_v1  ;;  %v1906_v8 = vld [vmem:[%s1872_s12 + $0x20] sm:$0xff]  ;;  %v1924_v11 = vld [vmem:[%s1872_s12 + $0x38] sm:$0xff]  ;;  %s647_s9 = sadd.s32 1, %s1779_s21  ;;  %v844_v28 = vld [vmem:[%s2157_s4 + $0x8] sm:$0xf]  ;;  %vm870_vm5 = vcmask 1043456  }
  0x20   : > { %1627 = vmatprep.mubr.msk.f32.mxu0 %vm394_vm1, %v1895_v4  ;;  %1638 = vmatprep.mubr.msk.f32.mxu1 %vm394_vm1, %v548_v5  ;;  %v1753_v12 = vld [vmem:[#allocation2 + $0x61] sm:%s1752_s30]  ;;  %v1756_v13 = vld [vmem:[#allocation2 + $0x69] sm:%s1752_s30]  ;;  %p648_p10 = scmp.lt.s32.totalorder %s647_s9, 4  ;;  %v1944_v24 = vld [vmem:[%s2156_s3] ss:$0 sm:$0xff]  ;;  %vm1800_vm6 = vmmov 1  }
  0x21   : > { %1639 = vmatmul.mubr.msk.f32.vlgmr.msra.gmra.mrb[0].mxu1 %vm394_vm1, %v549_v6  ;;  %663 = vst.msk [vmem:[#allocation2 + $0x1] sm:$0xff] %vm638_vm2, %v1753_v12  ;;  %664 = vst.msk [vmem:[#allocation2 + $0x9] sm:$0xff] %vm638_vm2, %v1756_v13  ;;  %v843_v27 = vld [vmem:[%s2157_s4] sm:$0xff]  ;;  %vm845_vm8 = vcmask 97280   ;;  %v1549_v60 = vld [vmem:[%s2157_s4 + $0x10] sm:$0xff] }
  0x22   : > { %s649_s10 = scalar_select %p648_p10, 1, 0  ;;  %v1689_v31 = vpack.c.bf16 %v844_v28, %v843_v27  ;;  %vm1955_vm7 = vmpackc.low %vm870_vm5, %vm1800_vm6  ;;  %v1550_v61 = vld [vmem:[%s2157_s4 + $0x18] sm:$0xf] }
  0x23   : > { %1628 = vmatmul.mubr.msk.f32.gmra.mrb[2].mxu0 %vm394_vm1, %v1902_v7  ;;  %v1695_v0 = vpack.c.bf16 %v1550_v61, %v1549_v60 }
  0x24   : > { %1630 = vmatprep.mubr.msk.f32.mxu0 %vm394_vm1, %v1906_v8  ;;  %v650_v26 = vstv %s649_s10  ;;  %1691 = vmatprep.subr.msk.bf16.mxu1 %vm1955_vm7, %v1689_v31 }
  0x25   : > { %vm651_vm11 = vcmp.eq.s32.totalorder %v650_v26, 1  ;;  %1694 = vmatpush3.bf16.msk.msra.mxu1 %vm1955_vm7, %v1689_v31  ;;  %1697 = vmatprep.subr.msk.bf16.mxu0 %vm1955_vm7, %v1695_v0 }
  0x26   : > { %1700 = vmatpush3.bf16.msk.msra.mxu0 %vm1955_vm7, %v1695_v0 }
  0x27   : > { %1631 = vmatmul.mubr.msk.f32.gmra.mrb[4].mxu0 %vm394_vm1, %v1914_v9 }
  0x28   : > { %1633 = vmatprep.mubr.msk.f32.mxu0 %vm394_vm1, %v1917_v10  ;;  %v689_v14 = vld [vmem:[#allocation2 + $0x1] sm:$0xff]  ;;  %v763_v16 = vld [vmem:[#allocation2 + $0xa] sm:$0xff] }
  0x29   : > { %v762_v15 = vld [vmem:[#allocation2 + $0x2] sm:$0xff]  ;;  %713 = vrot.lane.b32.xlu0 %v689_v14, %s1798_s7 }
  0x2a   : > { %786 = vrot.lane.b32.xlu1 %v762_v15, %s1799_s8  ;;  %v690_v17 = vld [vmem:[#allocation2 + $0x9] sm:$0xff]  ;;  %v665_v18 = vld [vmem:[#allocation2] sm:$0xff] }
  0x2b   : > { %1634 = vmatmul.mubr.msk.f32.gmra.mrb[6].mxu0 %vm394_vm1, %v1924_v11  ;;  %v666_v19 = vld [vmem:[#allocation2 + $0x8] sm:$0xff]  ;;  %677 = vst.msk [vmem:[#allocation3] sm:$0xff] %vm638_vm2, %v665_v18 }
  0x2c   : > { %678 = vst.msk [vmem:[#allocation3 + $0x8] sm:$0xff] %vm638_vm2, %v666_v19 }
  0x2d   : > { %715 = vrot.lane.b32.xlu0 %v690_v17, %s1798_s7 }
  0x2e   : > { %788 = vrot.lane.b32.xlu1 %v763_v16, %s1799_s8 }
  0x9b   : > { %v714_v20 = vpop.permute.xlu0 %713 }
  0x9c   : > { %v787_v21 = vpop.permute.xlu1 %786  ;;  %750 = vst.msk [vmem:[#allocation3] sm:$0xff] %vm749_vm3, %v714_v20 }
  0x9d   : > { %823 = vst.msk [vmem:[#allocation3] sm:$0xff] %vm822_vm4, %v787_v21 }
  0x9f   : > { %v716_v22 = vpop.permute.xlu0 %715 }
  0xa0   : > { %v789_v23 = vpop.permute.xlu1 %788  ;;  %751 = vst.msk [vmem:[#allocation3 + $0x8] sm:$0xff] %vm749_vm3, %v716_v22 }
  0xa1   : > { %824 = vst.msk [vmem:[#allocation3 + $0x8] sm:$0xff] %vm822_vm4, %v789_v23 }
  0xa4   : > { %v835_v35 = vld [vmem:[#allocation3] sm:$0xff] }
  0xa5   : > { %1645 = vmatprep.mubr.msk.f32.mxu1 %vm845_vm8, %v835_v35 }
  0xa8   : > { %v836_v49 = vld [vmem:[#allocation3 + $0x8] sm:$0xff] }
  0xa9   : > { %1646 = vmatmul.mubr.msk.f32.vlgmr.msra.gmra.mrb[2].mxu1 %vm845_vm8, %v836_v49 }
  0xf2   : > { %v1626_v25 = vpop.f32.mrb[0].mxu0 }
  0xf3   : > { %v491_v29 = vadd.f32 %v1626_v25, %v1944_v24  ;;  %v485_v30 = vpop.f32.mrb[1].mxu0 }
  0xf4   : > { %v486_v32 = vadd.f32 %v1944_v24, %v485_v30  ;;  %v1640_v33 = vpop.f32.mrb[0].mxu1  ;;  %v1561_v30 = vld [vmem:[%s2157_s4 + $0x28] sm:$0xf] }
  0xf5   : > { %vm525_vm9 = vcmp.ge.f32.partialorder %v491_v29, 0.0  ;;  %v533_v36 = vmul.f32 0.1, %v491_v29  ;;  %v628_v37 = vadd.f32 %v1640_v33, %v1944_v24  ;;  %v622_v38 = vpop.f32.mrb[1].mxu1 }
  0xf6   : > { %vm524_vm10 = vcmp.ge.f32.partialorder %v486_v32, 0.0  ;;  %v532_v39 = vmul.f32 0.1, %v486_v32  ;;  %v1629_v40 = vpop.f32.mrb[2].mxu0  ;;  %v623_v41 = vadd.f32 %v1944_v24, %v622_v38 }
  0xf7   : > { %v541_v42 = vsel %vm525_vm9, %v491_v29, %v533_v36  ;;  %v501_v43 = vadd.f32 %v1629_v40, %v1944_v24  ;;  %v495_v44 = vpop.f32.mrb[3].mxu0  ;;  %vm632_vm12 = vcmp.ge.f32.partialorder %v628_v37, 0.0  ;;  %v634_v45 = vmul.f32 0.1, %v628_v37  ;;  %v1560_v29 = vld [vmem:[%s2157_s4 + $0x20] sm:$0xff] }
  0xf8   : > { %640 = vst.msk [vmem:[#allocation2 + $0x21] sm:$0xff] %vm638_vm2, %v541_v42  ;;  %v540_v46 = vsel %vm524_vm10, %v486_v32, %v532_v39  ;;  %v496_v47 = vadd.f32 %v1944_v24, %v495_v44  ;;  %vm631_vm13 = vcmp.ge.f32.partialorder %v623_v41, 0.0  ;;  %v633_v48 = vmul.f32 0.1, %v623_v41 }
  0xf9   : > { %639 = vst.msk [vmem:[#allocation2 + $0x19] sm:$0xff] %vm638_vm2, %v540_v46  ;;  %vm527_vm14 = vcmp.ge.f32.partialorder %v501_v43, 0.0  ;;  %v535_v50 = vmul.f32 0.1, %v501_v43  ;;  %v636_v51 = vsel %vm632_vm12, %v628_v37, %v634_v45  ;;  %v1701_v35 = vpack.c.bf16 %v1561_v30, %v1560_v29 }
  0xfa   : > { %vm526_vm15 = vcmp.ge.f32.partialorder %v496_v47, 0.0  ;;  %v534_v52 = vmul.f32 0.1, %v496_v47  ;;  %v1632_v53 = vpop.f32.mrb[4].mxu0  ;;  %v653_v54 = vsel %vm651_vm11, %v636_v51, 0.0  ;;  %v635_v55 = vsel %vm631_vm13, %v623_v41, %v633_v48 }
  0xfb   : > { %v543_v56 = vsel %vm527_vm14, %v501_v43, %v535_v50  ;;  %v511_v57 = vadd.f32 %v1632_v53, %v1944_v24  ;;  %v505_v58 = vpop.f32.mrb[5].mxu0  ;;  %656 = vst.msk [vmem:[#allocation2 + $0x81] sm:$0xff] %vm638_vm2, %v653_v54  ;;  %v652_v59 = vsel %vm651_vm11, %v635_v55, 0.0  ;;  %1703 = vmatprep.subr.msk.bf16.mxu1 %vm1955_vm7, %v1701_v35 }
  0xfc   : > { %642 = vst.msk [vmem:[#allocation2 + $0x39] sm:$0xff] %vm638_vm2, %v543_v56  ;;  %v542_v62 = vsel %vm526_vm15, %v496_v47, %v534_v52  ;;  %v506_v63 = vadd.f32 %v1944_v24, %v505_v58  ;;  %655 = vst.msk [vmem:[#allocation2 + $0x79] sm:$0xff] %vm638_vm2, %v652_v59  ;;  %1706 = vmatpush3.bf16.msk.msra.mxu1 %vm1955_vm7, %v1701_v35 }
  0xfd   : > { %641 = vst.msk [vmem:[#allocation2 + $0x31] sm:$0xff] %vm638_vm2, %v542_v62  ;;  %vm529_vm0 = vcmp.ge.f32.partialorder %v511_v57, 0.0  ;;  %v537_v1 = vmul.f32 0.1, %v511_v57 }
  0xfe   : > { %vm528_vm5 = vcmp.ge.f32.partialorder %v506_v63, 0.0  ;;  %v536_v5 = vmul.f32 0.1, %v506_v63  ;;  %v1635_v6 = vpop.f32.mrb[6].mxu0 }
  0xff   : > { %v545_v12 = vsel %vm529_vm0, %v511_v57, %v537_v1  ;;  %v692_v13 = vld [vmem:[#allocation2 + $0x21] sm:$0xff]  ;;  %v521_v14 = vadd.f32 %v1635_v6, %v1944_v24  ;;  %v515_v15 = vpop.f32.mrb[7].mxu0 }
 0x100   : > { %644 = vst.msk [vmem:[#allocation2 + $0x51] sm:$0xff] %vm638_vm2, %v545_v12  ;;  %v544_v16 = vsel %vm528_vm5, %v506_v63, %v536_v5  ;;  %719 = vrot.lane.b32.xlu1 %v692_v13, %s1798_s7  ;;  %v691_v17 = vld [vmem:[#allocation2 + $0x19] sm:$0xff]  ;;  %v516_v18 = vadd.f32 %v1944_v24, %v515_v15  ;;  %v765_v23 = vld [vmem:[#allocation2 + $0x22] sm:$0xff] }
 0x101   : > { %v668_v19 = vld [vmem:[#allocation2 + $0x20] sm:$0xff]  ;;  %643 = vst.msk [vmem:[#allocation2 + $0x49] sm:$0xff] %vm638_vm2, %v544_v16  ;;  %717 = vrot.lane.b32.xlu0 %v691_v17, %s1798_s7  ;;  %vm531_vm6 = vcmp.ge.f32.partialorder %v521_v14, 0.0  ;;  %v539_v20 = vmul.f32 0.1, %v521_v14  ;;  %v667_v21 = vld [vmem:[#allocation2 + $0x18] sm:$0xff] }
 0x102   : > { %680 = vst.msk [vmem:[#allocation3 + $0x18] sm:$0xff] %vm638_vm2, %v668_v19  ;;  %vm530_vm9 = vcmp.ge.f32.partialorder %v516_v18, 0.0  ;;  %v538_v22 = vmul.f32 0.1, %v516_v18  ;;  %679 = vst.msk [vmem:[#allocation3 + $0x10] sm:$0xff] %vm638_vm2, %v667_v21  ;;  %v764_v26 = vld [vmem:[#allocation2 + $0x1a] sm:$0xff] }
 0x103   : > { %v547_v25 = vsel %vm531_vm6, %v521_v14, %v539_v20  ;;  %v676_v31 = vld [vmem:[#allocation2 + $0x80] sm:$0xff]  ;;  %v675_v32 = vld [vmem:[#allocation2 + $0x78] sm:$0xff] }
 0x104   : > { %792 = vrot.lane.b32.xlu1 %v765_v23, %s1799_s8  ;;  %646 = vst.msk [vmem:[#allocation2 + $0x69] sm:$0xff] %vm638_vm2, %v547_v25  ;;  %v546_v24 = vsel %vm530_vm9, %v516_v18, %v538_v22  ;;  %v670_v27 = vld [vmem:[#allocation2 + $0x38] sm:$0xff]  ;;  %v669_v28 = vld [vmem:[#allocation2 + $0x30] sm:$0xff]  ;;  %688 = vst.msk [vmem:[#allocation3 + $0x58] sm:$0xff] %vm638_vm2, %v676_v31 }
 0x105   : > { %790 = vrot.lane.b32.xlu0 %v764_v26, %s1799_s8  ;;  %645 = vst.msk [vmem:[#allocation2 + $0x61] sm:$0xff] %vm638_vm2, %v546_v24  ;;  %682 = vst.msk [vmem:[#allocation3 + $0x28] sm:$0xff] %vm638_vm2, %v670_v27  ;;  %v694_v33 = vld [vmem:[#allocation2 + $0x39] sm:$0xff]  ;;  %v693_v36 = vld [vmem:[#allocation2 + $0x31] sm:$0xff] }
 0x106   : > { %681 = vst.msk [vmem:[#allocation3 + $0x20] sm:$0xff] %vm638_vm2, %v669_v28  ;;  %687 = vst.msk [vmem:[#allocation3 + $0x50] sm:$0xff] %vm638_vm2, %v675_v32  ;;  %v767_v39 = vld [vmem:[#allocation2 + $0x3a] sm:$0xff]  ;;  %v766_v40 = vld [vmem:[#allocation2 + $0x32] sm:$0xff] }
 0x107   : > { %v696_v43 = vld [vmem:[#allocation2 + $0x51] sm:$0xff]  ;;  %v700_v50 = vld [vmem:[#allocation2 + $0x81] sm:$0xff]  ;;  %v699_v51 = vld [vmem:[#allocation2 + $0x79] sm:$0xff] }
 0x108   : > { %723 = vrot.lane.b32.xlu1 %v694_v33, %s1798_s7  ;;  %v672_v37 = vld [vmem:[#allocation2 + $0x50] sm:$0xff]  ;;  %v671_v38 = vld [vmem:[#allocation2 + $0x48] sm:$0xff]  ;;  %v772_v53 = vld [vmem:[#allocation2 + $0x7a] sm:$0xff] }
 0x109   : > { %721 = vrot.lane.b32.xlu0 %v693_v36, %s1798_s7  ;;  %684 = vst.msk [vmem:[#allocation3 + $0x38] sm:$0xff] %vm638_vm2, %v672_v37  ;;  %683 = vst.msk [vmem:[#allocation3 + $0x30] sm:$0xff] %vm638_vm2, %v671_v38  ;;  %v695_v44 = vld [vmem:[#allocation2 + $0x49] sm:$0xff]  ;;  %v769_v34 = vld [vmem:[#allocation2 + $0x52] sm:$0xff] }
 0x10a   : > { %v768_v45 = vld [vmem:[#allocation2 + $0x4a] sm:$0xff]  ;;  %v773_v52 = vld [vmem:[#allocation2 + $0x82] sm:$0xff] }
 0x10b   : > { %v698_v46 = vld [vmem:[#allocation2 + $0x69] sm:$0xff] }
 0x10c   : > { %796 = vrot.lane.b32.xlu1 %v767_v39, %s1799_s8  ;;  %v674_v41 = vld [vmem:[#allocation2 + $0x68] sm:$0xff]  ;;  %v673_v42 = vld [vmem:[#allocation2 + $0x60] sm:$0xff] }
 0x10d   : > { %794 = vrot.lane.b32.xlu0 %v766_v40, %s1799_s8  ;;  %686 = vst.msk [vmem:[#allocation3 + $0x48] sm:$0xff] %vm638_vm2, %v674_v41  ;;  %685 = vst.msk [vmem:[#allocation3 + $0x40] sm:$0xff] %vm638_vm2, %v673_v42  ;;  %v697_v47 = vld [vmem:[#allocation2 + $0x61] sm:$0xff]  ;;  %v771_v48 = vld [vmem:[#allocation2 + $0x6a] sm:$0xff] }
 0x10e   : > { %v770_v49 = vld [vmem:[#allocation2 + $0x62] sm:$0xff] }
 0x110   : > { %727 = vrot.lane.b32.xlu1 %v696_v43, %s1798_s7 }
 0x111   : > { %725 = vrot.lane.b32.xlu0 %v695_v44, %s1798_s7 }
 0x114   : > { %800 = vrot.lane.b32.xlu1 %v769_v34, %s1799_s8 }
 0x115   : > { %798 = vrot.lane.b32.xlu0 %v768_v45, %s1799_s8 }
 0x118   : > { %731 = vrot.lane.b32.xlu1 %v698_v46, %s1798_s7 }
 0x119   : > { %729 = vrot.lane.b32.xlu0 %v697_v47, %s1798_s7 }
 0x11c   : > { %804 = vrot.lane.b32.xlu1 %v771_v48, %s1799_s8 }
 0x11d   : > { %802 = vrot.lane.b32.xlu0 %v770_v49, %s1799_s8 }
 0x120   : > { %735 = vrot.lane.b32.xlu1 %v700_v50, %s1798_s7 }
 0x121   : > { %733 = vrot.lane.b32.xlu0 %v699_v51, %s1798_s7 }
 0x124   : > { %808 = vrot.lane.b32.xlu1 %v773_v52, %s1799_s8 }
 0x125   : > { %806 = vrot.lane.b32.xlu0 %v772_v53, %s1799_s8 }
 0x172   : > { %v720_v54 = vpop.permute.xlu1 %719 }
 0x173   : > { %753 = vst.msk [vmem:[#allocation3 + $0x18] sm:$0xff] %vm749_vm3, %v720_v54  ;;  %v718_v55 = vpop.permute.xlu0 %717 }
 0x174   : > { %752 = vst.msk [vmem:[#allocation3 + $0x10] sm:$0xff] %vm749_vm3, %v718_v55 }
 0x176   : > { %v793_v56 = vpop.permute.xlu1 %792 }
 0x177   : > { %826 = vst.msk [vmem:[#allocation3 + $0x18] sm:$0xff] %vm822_vm4, %v793_v56  ;;  %v791_v57 = vpop.permute.xlu0 %790 }
 0x178   : > { %825 = vst.msk [vmem:[#allocation3 + $0x10] sm:$0xff] %vm822_vm4, %v791_v57 }
 0x17a   : > { %v724_v58 = vpop.permute.xlu1 %723 }
 0x17b   : > { %755 = vst.msk [vmem:[#allocation3 + $0x28] sm:$0xff] %vm749_vm3, %v724_v58  ;;  %v722_v59 = vpop.permute.xlu0 %721 }
 0x17c   : > { %754 = vst.msk [vmem:[#allocation3 + $0x20] sm:$0xff] %vm749_vm3, %v722_v59  ;;  %v1647_v28 = vpop.f32.mrb[2].mxu1 }
 0x17d   : > { %980 = vst.msk [vmem:[#allocation4 + $0x8] sm:$0xff] %vm394_vm1, %v1647_v28  ;;  %v940_v29 = vpop.f32.mrb[3].mxu1 }
 0x17e   : > { %v797_v60 = vpop.permute.xlu1 %796  ;;  %v838_v63 = vld [vmem:[#allocation3 + $0x18] sm:$0xff]  ;;  %979 = vst.msk [vmem:[#allocation4] sm:$0xff] %vm394_vm1, %v940_v29 }
 0x17f   : > { %828 = vst.msk [vmem:[#allocation3 + $0x28] sm:$0xff] %vm822_vm4, %v797_v60  ;;  %v795_v61 = vpop.permute.xlu0 %794  ;;  %v837_v62 = vld [vmem:[#allocation3 + $0x10] sm:$0xff] }
 0x180   : > { %827 = vst.msk [vmem:[#allocation3 + $0x20] sm:$0xff] %vm822_vm4, %v795_v61  ;;  %1648 = vmatprep.mubr.msk.f32.mxu1 %vm845_vm8, %v837_v62  ;;  %1661 = vmatprep.mubr.msk.f32.mxu0 %vm845_vm8, %v837_v62 }
 0x181   : > { %1649 = vmatmul.mubr.msk.f32.gmra.mrb[4].mxu1 %vm845_vm8, %v838_v63  ;;  %1662 = vmatmul.mubr.msk.f32.vlgmr.msra.gmra.mrb[8].mxu0 %vm845_vm8, %v838_v63 }
 0x182   : > { %v728_v0 = vpop.permute.xlu1 %727 }
 0x183   : > { %757 = vst.msk [vmem:[#allocation3 + $0x38] sm:$0xff] %vm749_vm3, %v728_v0  ;;  %v726_v1 = vpop.permute.xlu0 %725 }
 0x184   : > { %756 = vst.msk [vmem:[#allocation3 + $0x30] sm:$0xff] %vm749_vm3, %v726_v1  ;;  %v1132_v30 = vld [vmem:[#allocation4 + $0x8] sm:$0xff] }
 0x185   : > { %v1131_v31 = vld [vmem:[#allocation4] sm:$0xff] }
 0x186   : > { %v801_v5 = vpop.permute.xlu1 %800  ;;  %v840_v13 = vld [vmem:[#allocation3 + $0x28] sm:$0xff] }
 0x187   : > { %830 = vst.msk [vmem:[#allocation3 + $0x38] sm:$0xff] %vm822_vm4, %v801_v5  ;;  %v799_v6 = vpop.permute.xlu0 %798  ;;  %v839_v12 = vld [vmem:[#allocation3 + $0x20] sm:$0xff] }
 0x188   : > { %829 = vst.msk [vmem:[#allocation3 + $0x30] sm:$0xff] %vm822_vm4, %v799_v6  ;;  %1651 = vmatprep.mubr.msk.f32.mxu1 %vm845_vm8, %v839_v12  ;;  %1664 = vmatprep.mubr.msk.f32.mxu0 %vm845_vm8, %v839_v12 }
 0x189   : > { %1652 = vmatmul.mubr.msk.f32.gmra.mrb[6].mxu1 %vm845_vm8, %v840_v13  ;;  %1665 = vmatmul.mubr.msk.f32.gmra.mrb[10].mxu0 %vm845_vm8, %v840_v13 }
 0x18a   : > { %v732_v14 = vpop.permute.xlu1 %731 }
 0x18b   : > { %759 = vst.msk [vmem:[#allocation3 + $0x48] sm:$0xff] %vm749_vm3, %v732_v14  ;;  %v730_v15 = vpop.permute.xlu0 %729 }
 0x18c   : > { %758 = vst.msk [vmem:[#allocation3 + $0x40] sm:$0xff] %vm749_vm3, %v730_v15 }
 0x18e   : > { %v805_v16 = vpop.permute.xlu1 %804  ;;  %v842_v19 = vld [vmem:[#allocation3 + $0x38] sm:$0xff] }
 0x18f   : > { %832 = vst.msk [vmem:[#allocation3 + $0x48] sm:$0xff] %vm822_vm4, %v805_v16  ;;  %v803_v17 = vpop.permute.xlu0 %802  ;;  %v841_v18 = vld [vmem:[#allocation3 + $0x30] sm:$0xff] }
 0x190   : > { %831 = vst.msk [vmem:[#allocation3 + $0x40] sm:$0xff] %vm822_vm4, %v803_v17  ;;  %1654 = vmatprep.mubr.msk.f32.mxu1 %vm845_vm8, %v841_v18  ;;  %1667 = vmatprep.mubr.msk.f32.mxu0 %vm845_vm8, %v841_v18  ;;  %v2098_v16 = vld [vmem:[%s2158_s5] ss:$0 sm:$0xff] }
 0x191   : > { %1655 = vmatmul.mubr.msk.f32.gmra.mrb[8].mxu1 %vm845_vm8, %v842_v19  ;;  %1668 = vmatmul.mubr.msk.f32.gmra.mrb[12].mxu0 %vm845_vm8, %v842_v19 }
 0x192   : > { %v736_v20 = vpop.permute.xlu1 %735  ;;  %1677 = vmatprep.mubr.msk.f32.mxu1 %vm845_vm8, %v839_v12 }
 0x193   : > { %761 = vst.msk [vmem:[#allocation3 + $0x58] sm:$0xff] %vm749_vm3, %v736_v20  ;;  %v734_v21 = vpop.permute.xlu0 %733 }
 0x194   : > { %760 = vst.msk [vmem:[#allocation3 + $0x50] sm:$0xff] %vm749_vm3, %v734_v21 }
 0x195   : > { %1678 = vmatmul.mubr.msk.f32.vlgmr.msra.gmra.mrb[10].mxu1 %vm845_vm8, %v840_v13 }
 0x196   : > { %v809_v22 = vpop.permute.xlu1 %808  ;;  %1680 = vmatprep.mubr.msk.f32.mxu1 %vm845_vm8, %v841_v18  ;;  %v995_v26 = vld [vmem:[#allocation3 + $0x48] sm:$0xff] }
 0x197   : > { %834 = vst.msk [vmem:[#allocation3 + $0x58] sm:$0xff] %vm822_vm4, %v809_v22  ;;  %v807_v23 = vpop.permute.xlu0 %806  ;;  %v994_v25 = vld [vmem:[#allocation3 + $0x40] sm:$0xff] }
 0x198   : > { %833 = vst.msk [vmem:[#allocation3 + $0x50] sm:$0xff] %vm822_vm4, %v807_v23  ;;  %1670 = vmatprep.mubr.msk.f32.mxu0 %vm845_vm8, %v994_v25 }
 0x199   : > { %1671 = vmatmul.mubr.msk.f32.gmra.mrb[14].mxu0 %vm845_vm8, %v995_v26  ;;  %1681 = vmatmul.mubr.msk.f32.gmra.mrb[12].mxu1 %vm845_vm8, %v842_v19 }
 0x19a   : > { %1683 = vmatprep.mubr.msk.f32.mxu1 %vm845_vm8, %v994_v25 }
 0x19d   : > { %1684 = vmatmul.mubr.msk.f32.gmra.mrb[14].mxu1 %vm845_vm8, %v995_v26 }
 0x19e   : > { %v1163_v27 = vld [vmem:[#allocation3 + $0x58] sm:$0xff] }
 0x19f   : > { %v1162_v24 = vld [vmem:[#allocation3 + $0x50] sm:$0xff] }
 0x1a0   : > { %1686 = vmatprep.mubr.msk.f32.mxu1 %vm845_vm8, %v1162_v24 }
 0x1a1   : > { %1687 = vmatmul.mubr.msk.f32.gmra.mrb[16].mxu1 %vm845_vm8, %v1163_v27 }
 0x254   : > { %v1650_v32 = vpop.f32.mrb[4].mxu1  ;;  %v1663_v33 = vpop.f32.mrb[8].mxu0 }
 0x255   : > { %982 = vst.msk [vmem:[#allocation4 + $0x18] sm:$0xff] %vm394_vm1, %v1650_v32  ;;  %v1140_v35 = vadd.f32 %v1663_v33, %v1132_v30  ;;  %v950_v36 = vpop.f32.mrb[5].mxu1  ;;  %v1092_v37 = vpop.f32.mrb[9].mxu0 }
 0x256   : > { %981 = vst.msk [vmem:[#allocation4 + $0x10] sm:$0xff] %vm394_vm1, %v950_v36  ;;  %v1139_v38 = vadd.f32 %v1131_v31, %v1092_v37 }
 0x257   : > { %1148 = vst.msk [vmem:[#allocation4 + $0x8] sm:$0xff] %vm394_vm1, %v1140_v35 }
 0x258   : > { %1147 = vst.msk [vmem:[#allocation4] sm:$0xff] %vm394_vm1, %v1139_v38 }
 0x25c   : > { %v1653_v39 = vpop.f32.mrb[6].mxu1  ;;  %v1666_v40 = vpop.f32.mrb[10].mxu0  ;;  %v1134_v41 = vld [vmem:[#allocation4 + $0x18] sm:$0xff] }
 0x25d   : > { %984 = vst.msk [vmem:[#allocation4 + $0x28] sm:$0xff] %vm394_vm1, %v1653_v39  ;;  %v1142_v42 = vadd.f32 %v1666_v40, %v1134_v41  ;;  %v960_v43 = vpop.f32.mrb[7].mxu1  ;;  %v1102_v44 = vpop.f32.mrb[11].mxu0  ;;  %v1133_v34 = vld [vmem:[#allocation4 + $0x10] sm:$0xff] }
 0x25e   : > { %983 = vst.msk [vmem:[#allocation4 + $0x20] sm:$0xff] %vm394_vm1, %v960_v43  ;;  %v1141_v45 = vadd.f32 %v1133_v34, %v1102_v44  ;;  %v1300_v55 = vld [vmem:[#allocation4 + $0x8] sm:$0xff] }
 0x25f   : > { %1150 = vst.msk [vmem:[#allocation4 + $0x18] sm:$0xff] %vm394_vm1, %v1142_v42  ;;  %v1299_v58 = vld [vmem:[#allocation4] sm:$0xff] }
 0x260   : > { %1149 = vst.msk [vmem:[#allocation4 + $0x10] sm:$0xff] %vm394_vm1, %v1141_v45 }
 0x264   : > { %v1656_v46 = vpop.f32.mrb[8].mxu1  ;;  %v1669_v47 = vpop.f32.mrb[12].mxu0  ;;  %v1136_v48 = vld [vmem:[#allocation4 + $0x28] sm:$0xff] }
 0x265   : > { %986 = vst.msk [vmem:[#allocation4 + $0x38] sm:$0xff] %vm394_vm1, %v1656_v46  ;;  %v1144_v49 = vadd.f32 %v1669_v47, %v1136_v48  ;;  %v970_v50 = vpop.f32.mrb[9].mxu1  ;;  %v1112_v51 = vpop.f32.mrb[13].mxu0  ;;  %v1135_v52 = vld [vmem:[#allocation4 + $0x20] sm:$0xff] }
 0x266   : > { %985 = vst.msk [vmem:[#allocation4 + $0x30] sm:$0xff] %vm394_vm1, %v970_v50  ;;  %v1143_v53 = vadd.f32 %v1135_v52, %v1112_v51  ;;  %v1302_v63 = vld [vmem:[#allocation4 + $0x18] sm:$0xff] }
 0x267   : > { %1152 = vst.msk [vmem:[#allocation4 + $0x28] sm:$0xff] %vm394_vm1, %v1144_v49  ;;  %v1301_v13 = vld [vmem:[#allocation4 + $0x10] sm:$0xff] }
 0x268   : > { %1151 = vst.msk [vmem:[#allocation4 + $0x20] sm:$0xff] %vm394_vm1, %v1143_v53  ;;  %v1679_v54 = vpop.f32.mrb[10].mxu1 }
 0x269   : > { %v1308_v56 = vadd.f32 %v1679_v54, %v1300_v55  ;;  %v1260_v57 = vpop.f32.mrb[11].mxu1 }
 0x26a   : > { %v1307_v59 = vadd.f32 %v1299_v58, %v1260_v57 }
 0x26b   : > { %1316 = vst.msk [vmem:[#allocation4 + $0x8] sm:$0xff] %vm394_vm1, %v1308_v56 }
 0x26c   : > { %1315 = vst.msk [vmem:[#allocation4] sm:$0xff] %vm394_vm1, %v1307_v59  ;;  %v1672_v60 = vpop.f32.mrb[14].mxu0  ;;  %v1138_v61 = vld [vmem:[#allocation4 + $0x38] sm:$0xff]  ;;  %v1682_v62 = vpop.f32.mrb[12].mxu1 }
 0x26d   : > { %v1146_v0 = vadd.f32 %v1672_v60, %v1138_v61  ;;  %v1310_v1 = vadd.f32 %v1682_v62, %v1302_v63  ;;  %v1122_v5 = vpop.f32.mrb[15].mxu0  ;;  %v1137_v6 = vld [vmem:[#allocation4 + $0x30] sm:$0xff]  ;;  %v1270_v12 = vpop.f32.mrb[13].mxu1 }
 0x26e   : > { %v1145_v14 = vadd.f32 %v1137_v6, %v1122_v5  ;;  %v1309_v15 = vadd.f32 %v1301_v13, %v1270_v12  ;;  %v1304_v18 = vld [vmem:[#allocation4 + $0x28] sm:$0xff] }
 0x26f   : > { %1154 = vst.msk [vmem:[#allocation4 + $0x38] sm:$0xff] %vm394_vm1, %v1146_v0  ;;  %1318 = vst.msk [vmem:[#allocation4 + $0x18] sm:$0xff] %vm394_vm1, %v1310_v1  ;;  %v1303_v21 = vld [vmem:[#allocation4 + $0x20] sm:$0xff] }
 0x270   : > { %1153 = vst.msk [vmem:[#allocation4 + $0x30] sm:$0xff] %vm394_vm1, %v1145_v14  ;;  %1317 = vst.msk [vmem:[#allocation4 + $0x10] sm:$0xff] %vm394_vm1, %v1309_v15  ;;  %v1685_v17 = vpop.f32.mrb[14].mxu1 }
 0x271   : > { %v1312_v19 = vadd.f32 %v1685_v17, %v1304_v18  ;;  %v1280_v20 = vpop.f32.mrb[15].mxu1 }
 0x272   : > { %v1324_v22 = vld [vmem:[#allocation4 + $0x8] sm:$0xff]  ;;  %v1311_v23 = vadd.f32 %v1303_v21, %v1280_v20 }
 0x273   : > { %v1339_v25 = vadd.f32 %v2098_v16, %v1324_v22  ;;  %v1323_v26 = vld [vmem:[#allocation4] sm:$0xff]  ;;  %1320 = vst.msk [vmem:[#allocation4 + $0x28] sm:$0xff] %vm394_vm1, %v1312_v19 }
 0x274   : > { %v1338_v24 = vadd.f32 %v2098_v16, %v1323_v26  ;;  %1319 = vst.msk [vmem:[#allocation4 + $0x20] sm:$0xff] %vm394_vm1, %v1311_v23  ;;  %v1688_v27 = vpop.f32.mrb[16].mxu1 }
 0x275   : > { %vm1347_vm2 = vcmp.ge.f32.partialorder %v1339_v25, 0.0  ;;  %v1355_v28 = vmul.f32 0.1, %v1339_v25  ;;  %v1290_v29 = vpop.f32.mrb[17].mxu1 }
 0x276   : > { %vm1346_vm3 = vcmp.ge.f32.partialorder %v1338_v24, 0.0  ;;  %v1354_v30 = vmul.f32 0.1, %v1338_v24  ;;  %v1326_v31 = vld [vmem:[#allocation4 + $0x18] sm:$0xff] }
 0x277   : > { %v1306_v32 = vld [vmem:[#allocation4 + $0x38] sm:$0xff]  ;;  %v1363_v33 = vsel %vm1347_vm2, %v1339_v25, %v1355_v28  ;;  %v1341_v35 = vadd.f32 %v2098_v16, %v1326_v31  ;;  %v1325_v36 = vld [vmem:[#allocation4 + $0x10] sm:$0xff] }
 0x278   : > { %v1314_v37 = vadd.f32 %v1688_v27, %v1306_v32  ;;  %v1305_v38 = vld [vmem:[#allocation4 + $0x30] sm:$0xff]  ;;  %v1371_v39 = vadd.f32 %v1363_v33, %v1890_v3  ;;  %v1362_v40 = vsel %vm1346_vm3, %v1338_v24, %v1354_v30  ;;  %v1340_v41 = vadd.f32 %v2098_v16, %v1325_v36 }
 0x279   : > { %v1313_v42 = vadd.f32 %v1305_v38, %v1290_v29  ;;  %v1370_v43 = vadd.f32 %v1362_v40, %v1887_v2  ;;  %vm1349_vm4 = vcmp.ge.f32.partialorder %v1341_v35, 0.0  ;;  %v1357_v44 = vmul.f32 0.1, %v1341_v35 }
 0x27a   : > { %1322 = vst.msk [vmem:[#allocation4 + $0x38] sm:$0xff] %vm394_vm1, %v1314_v37  ;;  %1379 = vst.msk [vmem:[%s1877_s15 + $0x8] sm:$0xff] %vm394_vm1, %v1371_v39  ;;  %vm1348_vm7 = vcmp.ge.f32.partialorder %v1340_v41, 0.0  ;;  %v1356_v34 = vmul.f32 0.1, %v1340_v41  ;;  %v1328_v45 = vld [vmem:[#allocation4 + $0x28] sm:$0xff] }
 0x27b   : > { %1321 = vst.msk [vmem:[#allocation4 + $0x30] sm:$0xff] %vm394_vm1, %v1313_v42  ;;  %1378 = vst.msk [vmem:[%s1877_s15] sm:$0xff] %vm394_vm1, %v1370_v43  ;;  %v1365_v3 = vsel %vm1349_vm4, %v1341_v35, %v1357_v44  ;;  %v1343_v46 = vadd.f32 %v2098_v16, %v1328_v45  ;;  %v1327_v47 = vld [vmem:[#allocation4 + $0x20] sm:$0xff] }
 0x27c   : > { %v1373_v2 = vadd.f32 %v1365_v3, %v1902_v7  ;;  %v1364_v48 = vsel %vm1348_vm7, %v1340_v41, %v1356_v34  ;;  %v1342_v49 = vadd.f32 %v2098_v16, %v1327_v47 }
 0x27d   : > { %v1372_v50 = vadd.f32 %v1364_v48, %v1895_v4  ;;  %vm1351_vm8 = vcmp.ge.f32.partialorder %v1343_v46, 0.0  ;;  %v1359_v51 = vmul.f32 0.1, %v1343_v46 }
 0x27e   : > { %1381 = vst.msk [vmem:[%s1877_s15 + $0x18] sm:$0xff] %vm394_vm1, %v1373_v2  ;;  %vm1350_vm10 = vcmp.ge.f32.partialorder %v1342_v49, 0.0  ;;  %v1358_v52 = vmul.f32 0.1, %v1342_v49 }
 0x27f   : > { %1380 = vst.msk [vmem:[%s1877_s15 + $0x10] sm:$0xff] %vm394_vm1, %v1372_v50  ;;  %v1367_v53 = vsel %vm1351_vm8, %v1343_v46, %v1359_v51 }
 0x280   : > { %v1375_v54 = vadd.f32 %v1367_v53, %v1914_v9  ;;  %v1366_v55 = vsel %vm1350_vm10, %v1342_v49, %v1358_v52 }
 0x281   : > { %v1330_v7 = vld [vmem:[#allocation4 + $0x38] sm:$0xff]  ;;  %v1374_v56 = vadd.f32 %v1366_v55, %v1906_v8 }
 0x282   : > { %v1345_v4 = vadd.f32 %v2098_v16, %v1330_v7  ;;  %v1329_v57 = vld [vmem:[#allocation4 + $0x30] sm:$0xff]  ;;  %1383 = vst.msk [vmem:[%s1877_s15 + $0x28] sm:$0xff] %vm394_vm1, %v1375_v54 }
 0x283   : > { %v1344_v58 = vadd.f32 %v2098_v16, %v1329_v57  ;;  %1382 = vst.msk [vmem:[%s1877_s15 + $0x20] sm:$0xff] %vm394_vm1, %v1374_v56 }
 0x284   : > { %vm1353_vm11 = vcmp.ge.f32.partialorder %v1345_v4, 0.0  ;;  %v1361_v59 = vmul.f32 0.1, %v1345_v4 }
 0x285   : > { %vm1352_vm12 = vcmp.ge.f32.partialorder %v1344_v58, 0.0  ;;  %v1360_v60 = vmul.f32 0.1, %v1344_v58 }
 0x286   : > { %v1369_v9 = vsel %vm1353_vm11, %v1345_v4, %v1361_v59 }
 0x287   : > { %v1377_v61 = vadd.f32 %v1369_v9, %v1924_v11  ;;  %v1368_v62 = vsel %vm1352_vm12, %v1344_v58, %v1360_v60 }
 0x288   : > { %v1376_v63 = vadd.f32 %v1368_v62, %v1917_v10 }
 0x289   : > { %1385 = vst.msk [vmem:[%s1877_s15 + $0x38] sm:$0xff] %vm394_vm1, %v1377_v61 }
 0x28a   : > { %1384 = vst.msk [vmem:[%s1877_s15 + $0x30] sm:$0xff] %vm394_vm1, %v1376_v63 }
 0x28b PF: > { %s16_s25 = sadd.s32 1, %s1795_s25   ;;  %s2162_s21 = smov %s1787_s23 }
 0x28c   : > { %p13_p11 = scmp.ge.s32.totalorder %s16_s25, 10   ;;  %s2163_s22 = smov %s1791_s24 }
 0x28d   : > { %s2164_s23 = smov %s2167_s26  ;;  %s2165_s24 = smov %s2171_s27 }
 0x28e   :  { %15 = sbr.rel (!%p13_p11) target bundleno = 3 (0x3), region = 88 }

</bundles_post_ra>
